<compile_context>
chip_gen: v6e
topology: v6e:2x2x1
jax: 0.10.0
libtpu: 0.0.40
codegen_flags: <defaults>
</compile_context>

<pallas_src>
import jax
import jax.numpy as jnp
from jax.experimental import pallas as pl
from jax.experimental.pallas import tpu as pltpu


# ----------------------------- Pallas kernel ------------------------------


def _hybrid_kernel(x_ref, wcat_ref, bcat_ref, w2_ref, b2_ref,
                   lin_ref, mlp_ref):
    """Fused forward of both torch sub-modules on one batch tile.

      cat         = x @ [lin_w | mlp_w1] + [lin_b | mlp_b1]   (one MXU matmul)
      linear_head = cat[:, :H]
      mlp         = relu(cat[:, H:]) @ mlp_w2 + mlp_b2        (second matmul)
    """
    H = lin_ref.shape[-1]            # split point (lane-aligned when H % 128 == 0)

    # bf16 operands -> MXU, f32 accumulation.  If x is already bf16 the cast
    # is a no-op (callers may hand bf16 activations to halve the x DMA bytes).
    x_bf = x_ref[...].astype(jnp.bfloat16)
    cat = jnp.dot(x_bf, wcat_ref[...], preferred_element_type=jnp.float32)
    cat = cat + bcat_ref[...]                     # f32 bias add on the VPU

    # Store linear_head FIRST so the first H columns of `cat` die immediately.
    lin_ref[...] = cat[:, :H].astype(lin_ref.dtype)

    # ReLU in f32 on the VPU (v5e has no bf16 VALU), then cast straight to
    # bf16 so the wide f32 hidden never stays live into the second matmul
    # (keeps large batch tiles inside the 64-vreg file; no spill traffic).
    h_bf = jnp.maximum(cat[:, H:], 0.0).astype(jnp.bfloat16)
    acc2 = jnp.dot(h_bf, w2_ref[...], preferred_element_type=jnp.float32)
    mlp_ref[...] = (acc2 + b2_ref[...]).astype(mlp_ref.dtype)


def _pick_batch_tile(bp):
    """Largest tile that (a) divides the (padded) batch, (b) keeps >= 2 grid
    steps so both v7x TensorCores get work, (c) prefers multiples of 256 to
    fill the 2x256^2 MXU M on v6e/v7x.  On v5e (4x128^2 MXU) a 256/512-row
    tile is simply extra M passes and is never worse at the mem-bound point.
    """
    if bp <= 8:
        return bp
    for t in (512, 256, 128, 64, 32, 16, 8):
        if bp % t == 0 and bp // t >= 2:
            return t
    return 8


def hybrid_forward(x, w_cat, b_cat, w2, b2, *, batch_tile=None, out_dtype=None):
    """One fused pallas_call producing (linear_head, mlp).

    x      : (B, H)     f32 or bf16 activations
    w_cat  : (H, H+MH)  bf16  == concat([lin_w, mlp_w1], axis=1)
    b_cat  : (1, H+MH)  f32   == concat([lin_b, mlp_b1], axis=1)
    w2     : (MH, H)    bf16
    b2     : (1, H)     f32
    """
    B, H = x.shape
    Hc = w_cat.shape[1]
    MH, Ho = w2.shape
    assert Ho == H and Hc == H + MH, "concat weight layout mismatch"
    # NOTE: H % 128 == 0 keeps the cat[:, :H] / cat[:, H:] split lane-aligned;
    # other H still run but pay in-kernel relayout copies.

    out_dtype = x.dtype if out_dtype is None else out_dtype

    # Sublane-align the batch (a block's row count must be a multiple of 8
    # unless it spans the whole array) instead of hard-failing on odd B.
    if B > 8 and B % 8 != 0:
        Bp = ((B + 7) // 8) * 8
        x = jnp.pad(x, ((0, Bp - B), (0, 0)))
    else:
        Bp = B

    if batch_tile is None:
        batch_tile = _pick_batch_tile(Bp)
    assert Bp % batch_tile == 0
    grid = (Bp // batch_tile,)

    def run(single_buffer_weights):
        wkw = ({"pipeline_mode": pl.Buffered(1)} if single_buffer_weights
               else {})
        # Grid-invariant operands: block index never changes, so single-buffer
        # them (halves resident weight VMEM at real H).
        invariant = lambda shape: pl.BlockSpec(
            shape, lambda i: (0,) * len(shape), **wkw)
        out_spec = pl.BlockSpec((batch_tile, Ho), lambda i: (i, 0))
        return pl.pallas_call(
            _hybrid_kernel,
            out_shape=(jax.ShapeDtypeStruct((Bp, Ho), out_dtype),   # linear_head
                       jax.ShapeDtypeStruct((Bp, Ho), out_dtype)),  # mlp
            grid=grid,
            in_specs=[pl.BlockSpec((batch_tile, H), lambda i: (i, 0)),  # x tile
                      invariant((H, Hc)),                               # W_cat
                      invariant((1, Hc)),                               # b_cat
                      invariant((MH, Ho)),                              # W2
                      invariant((1, Ho))],                              # b2
            out_specs=(out_spec, out_spec),
            compiler_params=pltpu.CompilerParams(
                dimension_semantics=("parallel",)),
        )(x, w_cat, b_cat, w2, b2)

    try:
        lin, mlp = run(single_buffer_weights=True)
    except Exception:  # pragma: no cover
        # jax versions where Buffered(1) is not accepted by the auto-pipeline:
        # fall back to default double-buffered invariant weights.
        lin, mlp = run(single_buffer_weights=False)

    if Bp != B:
        lin, mlp = lin[:B], mlp[:B]
    return lin, mlp


# --------------------------- HybridModule wrapper --------------------------


class HybridModuleJAX:
    """JAX/Pallas mirror of HybridModule.forward: runs every registered
    torch-style sub-module on the same input and returns {name: output}."""

    def __init__(self, hidden, mlp_hidden, key):
        k1, k2, k3, k4, k5, k6 = jax.random.split(key, 6)
        lim_h = 1.0 / jnp.sqrt(hidden)
        lim_m = 1.0 / jnp.sqrt(mlp_hidden)
        # "linear_head": nn.Linear(hidden, hidden)
        lin_w = jax.random.uniform(k1, (hidden, hidden), jnp.float32,
                                   -lim_h, lim_h)
        lin_b = jax.random.uniform(k2, (1, hidden), jnp.float32, -lim_h, lim_h)
        # "mlp": Linear(hidden, mlp_hidden) -> ReLU -> Linear(mlp_hidden, hidden)
        mlp_w1 = jax.random.uniform(k3, (hidden, mlp_hidden), jnp.float32,
                                    -lim_h, lim_h)
        mlp_b1 = jax.random.uniform(k4, (1, mlp_hidden), jnp.float32,
                                    -lim_h, lim_h)
        mlp_w2 = jax.random.uniform(k5, (mlp_hidden, hidden), jnp.float32,
                                    -lim_m, lim_m)
        mlp_b2 = jax.random.uniform(k6, (1, hidden), jnp.float32,
                                    -lim_m, lim_m)

        self.hidden = hidden
        # bf16 weights (MXU operands, half the DMA bytes); f32 biases (VPU).
        # NOTE: bf16 weights/operands deviate slightly from torch f32 Linear
        # numerics (covered by the 2e-2 tolerances below).
        self.w_cat = jnp.concatenate([lin_w, mlp_w1], axis=1).astype(jnp.bfloat16)
        self.b_cat = jnp.concatenate([lin_b, mlp_b1], axis=1)
        self.w2 = mlp_w2.astype(jnp.bfloat16)
        self.b2 = mlp_b2

    def forward(self, x, *, out_dtype=None):
        # (no LLM modules -- see TODO(synk) at the top)
        lin_out, mlp_out = hybrid_forward(x, self.w_cat, self.b_cat,
                                          self.w2, self.b2,
                                          out_dtype=out_dtype)
        torch_outputs = {"linear_head": lin_out, "mlp": mlp_out}
        return {**torch_outputs}

    __call__ = forward


# --------------------------------- driver ----------------------------------


if __name__ == "__main__":
    B, H, MH = 16, 128, 256   # batch, hidden, mlp hidden (small, tile-aligned)
    key = jax.random.PRNGKey(0)
    k_param, k_x = jax.random.split(key)

    model = HybridModuleJAX(H, MH, k_param)
    x = jax.random.normal(k_x, (B, H), jnp.float32)

    out = jax.block_until_ready(model(x))

    # Reference check against plain JAX with the same bf16 matmul operands /
    # f32 accumulation so numerics match the kernel.
    xb = x.astype(jnp.bfloat16)
    ref_cat = jnp.dot(xb, model.w_cat,
                      preferred_element_type=jnp.float32) + model.b_cat
    ref_lin = ref_cat[:, :H]
    ref_h = jnp.maximum(ref_cat[:, H:], 0.0)
    ref_mlp = jnp.dot(ref_h.astype(jnp.bfloat16), model.w2,
                      preferred_element_type=jnp.float32) + model.b2

    assert out["linear_head"].shape == (B, H)
    assert out["mlp"].shape == (B, H)
    assert jnp.allclose(out["linear_head"], ref_lin, atol=2e-2, rtol=2e-2)
    assert jnp.allclose(out["mlp"], ref_mlp, atol=2e-2, rtol=2e-2)

    # bf16-output path (halves output HBM bytes at large B) + a batch that is
    # not a multiple of 8 (exercises the padding / slice-back path).
    x_odd = x[:12]
    lin_bf, mlp_bf = hybrid_forward(x_odd, model.w_cat, model.b_cat,
                                    model.w2, model.b2,
                                    out_dtype=jnp.bfloat16)
    jax.block_until_ready((lin_bf, mlp_bf))
    assert lin_bf.shape == (12, H) and lin_bf.dtype == jnp.bfloat16
    assert mlp_bf.shape == (12, H) and mlp_bf.dtype == jnp.bfloat16
    assert jnp.allclose(lin_bf.astype(jnp.float32), ref_lin[:12],
                        atol=5e-2, rtol=5e-2)
    assert jnp.allclose(mlp_bf.astype(jnp.float32), ref_mlp[:12],
                        atol=5e-2, rtol=5e-2)

    print("KERNEL_OK")
</pallas_src>

<mosaic_0001>
module attributes {stable_mosaic.version = 11 : i64} {
  func.func @_hybrid_kernel(%arg0: i32, %arg1: memref<8x128xf32, #tpu.memory_space<vmem>>, %arg2: memref<128x384xbf16, #tpu.memory_space<vmem>>, %arg3: memref<1x384xf32, #tpu.memory_space<vmem>>, %arg4: memref<256x128xbf16, #tpu.memory_space<vmem>>, %arg5: memref<1x128xf32, #tpu.memory_space<vmem>>, %arg6: memref<8x128xf32, #tpu.memory_space<vmem>>, %arg7: memref<8x128xf32, #tpu.memory_space<vmem>>) attributes {dimension_semantics = [#tpu.dimension_semantics<parallel>], iteration_bounds = array<i64: 2>, scalar_prefetch = 0 : i64, scratch_operands = 0 : i64, tpu.core_type = #tpu.core_type<tc>, window_params = [{transform_indices = @transform_0, window_bounds = array<i64: 8, 128>}, {pipeline_mode = #tpu.pipeline_mode<synchronous>, transform_indices = @transform_1, window_bounds = array<i64: 128, 384>}, {pipeline_mode = #tpu.pipeline_mode<synchronous>, transform_indices = @transform_2, window_bounds = array<i64: 1, 384>}, {pipeline_mode = #tpu.pipeline_mode<synchronous>, transform_indices = @transform_3, window_bounds = array<i64: 256, 128>}, {pipeline_mode = #tpu.pipeline_mode<synchronous>, transform_indices = @transform_4, window_bounds = array<i64: 1, 128>}, {transform_indices = @transform_5, window_bounds = array<i64: 8, 128>}, {transform_indices = @transform_6, window_bounds = array<i64: 8, 128>}]} {
    %c0 = arith.constant 0 : index
    %c0_0 = arith.constant 0 : index
    %0 = vector.load %arg1[%c0, %c0_0] : memref<8x128xf32, #tpu.memory_space<vmem>>, vector<8x128xf32>
    %1 = arith.truncf %0 : vector<8x128xf32> to vector<8x128xbf16>
    %c0_1 = arith.constant 0 : index
    %c0_2 = arith.constant 0 : index
    %2 = vector.load %arg2[%c0_1, %c0_2] : memref<128x384xbf16, #tpu.memory_space<vmem>>, vector<128x384xbf16>
    %cst = arith.constant dense<0.000000e+00> : vector<8x384xf32>
    %3 = tpu.matmul %1, %2, %cst {dimension_numbers = #tpu.dot_dimension_numbers<[1], [0], [0], [1], [0, 0, 1, 1], [], []>} : vector<8x128xbf16>, vector<128x384xbf16>, vector<8x384xf32> -> vector<8x384xf32>
    %c0_3 = arith.constant 0 : index
    %c0_4 = arith.constant 0 : index
    %4 = vector.load %arg3[%c0_3, %c0_4] : memref<1x384xf32, #tpu.memory_space<vmem>>, vector<1x384xf32>
    %5 = vector.broadcast %4 : vector<1x384xf32> to vector<8x384xf32>
    %6 = arith.addf %3, %5 : vector<8x384xf32>
    %7 = vector.extract_strided_slice %6 {offsets = [0, 0], sizes = [8, 128], strides = [1, 1]} : vector<8x384xf32> to vector<8x128xf32>
    %c0_5 = arith.constant 0 : index
    %c0_6 = arith.constant 0 : index
    %8 = vector.load %arg6[%c0_5, %c0_6] : memref<8x128xf32, #tpu.memory_space<vmem>>, vector<8x128xf32>
    tpu.vector_store %arg6[%c0_5, %c0_6], %7 {strides = array<i32>} : memref<8x128xf32, #tpu.memory_space<vmem>>, vector<8x128xf32>,
    %9 = vector.extract_strided_slice %6 {offsets = [0, 128], sizes = [8, 256], strides = [1, 1]} : vector<8x384xf32> to vector<8x256xf32>
    %cst_7 = arith.constant 0.000000e+00 : f32
    %10 = vector.broadcast %cst_7 : f32 to vector<8x256xf32>
    %11 = arith.maximumf %9, %10 : vector<8x256xf32>
    %12 = arith.truncf %11 : vector<8x256xf32> to vector<8x256xbf16>
    %c0_8 = arith.constant 0 : index
    %c0_9 = arith.constant 0 : index
    %13 = vector.load %arg4[%c0_8, %c0_9] : memref<256x128xbf16, #tpu.memory_space<vmem>>, vector<256x128xbf16>
    %cst_10 = arith.constant dense<0.000000e+00> : vector<8x128xf32>
    %14 = tpu.matmul %12, %13, %cst_10 {dimension_numbers = #tpu.dot_dimension_numbers<[1], [0], [0], [1], [0, 0, 1, 1], [], []>} : vector<8x256xbf16>, vector<256x128xbf16>, vector<8x128xf32> -> vector<8x128xf32>
    %c0_11 = arith.constant 0 : index
    %c0_12 = arith.constant 0 : index
    %15 = vector.load %arg5[%c0_11, %c0_12] : memref<1x128xf32, #tpu.memory_space<vmem>>, vector<1x128xf32>
    %16 = vector.broadcast %15 : vector<1x128xf32> to vector<8x128xf32>
    %17 = arith.addf %14, %16 : vector<8x128xf32>
    %c0_13 = arith.constant 0 : index
    %c0_14 = arith.constant 0 : index
    %18 = vector.load %arg7[%c0_13, %c0_14] : memref<8x128xf32, #tpu.memory_space<vmem>>, vector<8x128xf32>
    tpu.vector_store %arg7[%c0_13, %c0_14], %17 {strides = array<i32>} : memref<8x128xf32, #tpu.memory_space<vmem>>, vector<8x128xf32>,
    return
  }
  func.func @transform_0(%arg0: i32) -> (i32, i32) {
    %c0_i32 = arith.constant 0 : i32
    %c0_i32_0 = arith.constant 0 : i32
    return %arg0, %c0_i32 : i32, i32
  }
  func.func @transform_1(%arg0: i32) -> (i32, i32) {
    %c0_i32 = arith.constant 0 : i32
    %c0_i32_0 = arith.constant 0 : i32
    %c0_i32_1 = arith.constant 0 : i32
    return %c0_i32, %c0_i32_0 : i32, i32
  }
  func.func @transform_2(%arg0: i32) -> (i32, i32) {
    %c0_i32 = arith.constant 0 : i32
    %c0_i32_0 = arith.constant 0 : i32
    %c0_i32_1 = arith.constant 0 : i32
    return %c0_i32, %c0_i32_0 : i32, i32
  }
  func.func @transform_3(%arg0: i32) -> (i32, i32) {
    %c0_i32 = arith.constant 0 : i32
    %c0_i32_0 = arith.constant 0 : i32
    %c0_i32_1 = arith.constant 0 : i32
    return %c0_i32, %c0_i32_0 : i32, i32
  }
  func.func @transform_4(%arg0: i32) -> (i32, i32) {
    %c0_i32 = arith.constant 0 : i32
    %c0_i32_0 = arith.constant 0 : i32
    %c0_i32_1 = arith.constant 0 : i32
    return %c0_i32, %c0_i32_0 : i32, i32
  }
  func.func @transform_5(%arg0: i32) -> (i32, i32) {
    %c0_i32 = arith.constant 0 : i32
    %c0_i32_0 = arith.constant 0 : i32
    return %arg0, %c0_i32 : i32, i32
  }
  func.func @transform_6(%arg0: i32) -> (i32, i32) {
    %c0_i32 = arith.constant 0 : i32
    %c0_i32_0 = arith.constant 0 : i32
    return %arg0, %c0_i32 : i32, i32
  }
}

module attributes {stable_mosaic.version = 11 : i64} {
  func.func @_hybrid_kernel(%arg0: i32, %arg1: memref<8x128xf32, #tpu.memory_space<vmem>>, %arg2: memref<128x384xbf16, #tpu.memory_space<vmem>>, %arg3: memref<1x384xf32, #tpu.memory_space<vmem>>, %arg4: memref<256x128xbf16, #tpu.memory_space<vmem>>, %arg5: memref<1x128xf32, #tpu.memory_space<vmem>>, %arg6: memref<8x128xf32, #tpu.memory_space<vmem>>, %arg7: memref<8x128xf32, #tpu.memory_space<vmem>>) attributes {dimension_semantics = [#tpu.dimension_semantics<parallel>], iteration_bounds = array<i64: 2>, scalar_prefetch = 0 : i64, scratch_operands = 0 : i64, tpu.core_type = #tpu.core_type<tc>, window_params = [{transform_indices = @transform_0, window_bounds = array<i64: 8, 128>}, {pipeline_mode = #tpu.pipeline_mode<synchronous>, transform_indices = @transform_1, window_bounds = array<i64: 128, 384>}, {pipeline_mode = #tpu.pipeline_mode<synchronous>, transform_indices = @transform_2, window_bounds = array<i64: 1, 384>}, {pipeline_mode = #tpu.pipeline_mode<synchronous>, transform_indices = @transform_3, window_bounds = array<i64: 256, 128>}, {pipeline_mode = #tpu.pipeline_mode<synchronous>, transform_indices = @transform_4, window_bounds = array<i64: 1, 128>}, {transform_indices = @transform_5, window_bounds = array<i64: 8, 128>}, {transform_indices = @transform_6, window_bounds = array<i64: 8, 128>}]} {
    %c0 = arith.constant 0 : index
    %c0_0 = arith.constant 0 : index
    %0 = vector.load %arg1[%c0, %c0_0] : memref<8x128xf32, #tpu.memory_space<vmem>>, vector<8x128xf32>
    %1 = arith.truncf %0 : vector<8x128xf32> to vector<8x128xbf16>
    %c0_1 = arith.constant 0 : index
    %c0_2 = arith.constant 0 : index
    %2 = vector.load %arg2[%c0_1, %c0_2] : memref<128x384xbf16, #tpu.memory_space<vmem>>, vector<128x384xbf16>
    %cst = arith.constant dense<0.000000e+00> : vector<8x384xf32>
    %3 = tpu.matmul %1, %2, %cst {dimension_numbers = #tpu.dot_dimension_numbers<[1], [0], [0], [1], [0, 0, 1, 1], [], []>} : vector<8x128xbf16>, vector<128x384xbf16>, vector<8x384xf32> -> vector<8x384xf32>
    %c0_3 = arith.constant 0 : index
    %c0_4 = arith.constant 0 : index
    %4 = vector.load %arg3[%c0_3, %c0_4] : memref<1x384xf32, #tpu.memory_space<vmem>>, vector<1x384xf32>
    %5 = vector.broadcast %4 : vector<1x384xf32> to vector<8x384xf32>
    %6 = arith.addf %3, %5 : vector<8x384xf32>
    %7 = vector.extract_strided_slice %6 {offsets = [0, 0], sizes = [8, 128], strides = [1, 1]} : vector<8x384xf32> to vector<8x128xf32>
    %c0_5 = arith.constant 0 : index
    %c0_6 = arith.constant 0 : index
    %8 = vector.load %arg6[%c0_5, %c0_6] : memref<8x128xf32, #tpu.memory_space<vmem>>, vector<8x128xf32>
    tpu.vector_store %arg6[%c0_5, %c0_6], %7 {strides = array<i32>} : memref<8x128xf32, #tpu.memory_space<vmem>>, vector<8x128xf32>,
    %9 = vector.extract_strided_slice %6 {offsets = [0, 128], sizes = [8, 256], strides = [1, 1]} : vector<8x384xf32> to vector<8x256xf32>
    %cst_7 = arith.constant 0.000000e+00 : f32
    %10 = vector.broadcast %cst_7 : f32 to vector<8x256xf32>
    %11 = arith.maximumf %9, %10 : vector<8x256xf32>
    %12 = arith.truncf %11 : vector<8x256xf32> to vector<8x256xbf16>
    %c0_8 = arith.constant 0 : index
    %c0_9 = arith.constant 0 : index
    %13 = vector.load %arg4[%c0_8, %c0_9] : memref<256x128xbf16, #tpu.memory_space<vmem>>, vector<256x128xbf16>
    %cst_10 = arith.constant dense<0.000000e+00> : vector<8x128xf32>
    %14 = tpu.matmul %12, %13, %cst_10 {dimension_numbers = #tpu.dot_dimension_numbers<[1], [0], [0], [1], [0, 0, 1, 1], [], []>} : vector<8x256xbf16>, vector<256x128xbf16>, vector<8x128xf32> -> vector<8x128xf32>
    %c0_11 = arith.constant 0 : index
    %c0_12 = arith.constant 0 : index
    %15 = vector.load %arg5[%c0_11, %c0_12] : memref<1x128xf32, #tpu.memory_space<vmem>>, vector<1x128xf32>
    %16 = vector.broadcast %15 : vector<1x128xf32> to vector<8x128xf32>
    %17 = arith.addf %14, %16 : vector<8x128xf32>
    %c0_13 = arith.constant 0 : index
    %c0_14 = arith.constant 0 : index
    %18 = vector.load %arg7[%c0_13, %c0_14] : memref<8x128xf32, #tpu.memory_space<vmem>>, vector<8x128xf32>
    tpu.vector_store %arg7[%c0_13, %c0_14], %17 {strides = array<i32>} : memref<8x128xf32, #tpu.memory_space<vmem>>, vector<8x128xf32>,
    return
  }
  func.func @transform_0(%arg0: i32) -> (i32, i32) {
    %c0_i32 = arith.constant 0 : i32
    %c0_i32_0 = arith.constant 0 : i32
    return %arg0, %c0_i32 : i32, i32
  }
  func.func @transform_1(%arg0: i32) -> (i32, i32) {
    %c0_i32 = arith.constant 0 : i32
    %c0_i32_0 = arith.constant 0 : i32
    %c0_i32_1 = arith.constant 0 : i32
    return %c0_i32, %c0_i32_0 : i32, i32
  }
  func.func @transform_2(%arg0: i32) -> (i32, i32) {
    %c0_i32 = arith.constant 0 : i32
    %c0_i32_0 = arith.constant 0 : i32
    %c0_i32_1 = arith.constant 0 : i32
    return %c0_i32, %c0_i32_0 : i32, i32
  }
  func.func @transform_3(%arg0: i32) -> (i32, i32) {
    %c0_i32 = arith.constant 0 : i32
    %c0_i32_0 = arith.constant 0 : i32
    %c0_i32_1 = arith.constant 0 : i32
    return %c0_i32, %c0_i32_0 : i32, i32
  }
  func.func @transform_4(%arg0: i32) -> (i32, i32) {
    %c0_i32 = arith.constant 0 : i32
    %c0_i32_0 = arith.constant 0 : i32
    %c0_i32_1 = arith.constant 0 : i32
    return %c0_i32, %c0_i32_0 : i32, i32
  }
  func.func @transform_5(%arg0: i32) -> (i32, i32) {
    %c0_i32 = arith.constant 0 : i32
    %c0_i32_0 = arith.constant 0 : i32
    return %arg0, %c0_i32 : i32, i32
  }
  func.func @transform_6(%arg0: i32) -> (i32, i32) {
    %c0_i32 = arith.constant 0 : i32
    %c0_i32_0 = arith.constant 0 : i32
    return %arg0, %c0_i32 : i32, i32
  }
}

</mosaic_0001>

<bundles_post_ra>
// kernel: tpu_custom_call.1
= control target key start
LH: loop header
LB: loop body
LE: loop exit
PB: predicated region body
PF: predicated region fallthrough
CT: control target
= control target key end

     0   :  { %s1571_s0 = inlined_call_operand.hbm [shape: f32[16,128], index: 0, kind: input, shape index: {}]   ;;  %s1572_s1 = inlined_call_operand.hbm [shape: bf16[128,384], index: 1, kind: input, shape index: {}]   ;;  %s1573_s2 = inlined_call_operand.vmem [shape: f32[1,384], index: 2, kind: input, shape index: {}]   ;;  %s1574_s3 = inlined_call_operand.hbm [shape: bf16[256,128], index: 3, kind: input, shape index: {}]   ;;  %s1575_s4 = inlined_call_operand.vmem [shape: f32[1,128], index: 4, kind: input, shape index: {}]   ;;  %s1576_s5 = inlined_call_operand.hbm [shape: f32[16,128], index: 5, kind: output, shape index: {0}]   ;;  %s1577_s6 = inlined_call_operand.hbm [shape: f32[16,128], index: 6, kind: output, shape index: {1}]  }
   0x1   :  { %1582 = sst [smem:[#allocation15_spill]] %s1572_s1 }
   0x2   :  { %12 = vsyncpa [#allocation3], 0 }
   0x3   :  { %14 = vsyncpa [#allocation3 + $0x1], 0 }
   0x4   :  { %15 = vsyncpa [#allocation6], 0 }
   0x5   :  { %16 = vsyncpa [#allocation4], 0 }
   0x6   :  { %18 = vsyncpa [#allocation4 + $0x1], 0 }
   0x7   :  { %19 = vsyncpa [#allocation10], 0 }
   0x8   :  { %21 = vsyncpa [#allocation10 + $0x1], 0  ;;  %s1367_s21 = smov 0   ;;  %s1369_s22 = smov 0  }
   0x9   :  { %s1371_s23 = smov 0   ;;  %s1373_s24 = smov 0  }
   0xa LB: > { %s1388_s25 = sadd.s32 4294967295, %s1318_s24   ;;  %s902_s26 = sadd.s32 4294967294, %s1318_s24   ;;  %s1318_s24 = sphi %s1373_s24, %s1601_s24   ;;  %s1314_s23 = sphi %s1371_s23, %s1600_s23   ;;  %s1310_s22 = sphi %s1369_s22, %s1599_s22   ;;  %s1306_s21 = sphi %s1367_s21, %s1598_s21  }
   0xb   : > { %p47_p0 = scmp.ne.s32.totalorder %s1310_s22, %s1306_s21  ;;  %p1578_p1 = scmp.eq.s32.totalorder %s1388_s25, 0 }
   0xc   : > { %p161_p3 = scmp.eq.s32.totalorder %s902_s26, 1  ;;  %p903_p5 = scmp.ge.s32.totalorder %s1318_s24, 1 }
   0xd   : > { %p1397_p4 = por %p1578_p1, %p47_p0  ;;  %p194_p7 = scmp.lt.s32.totalorder %s1318_s24, 3 }
   0xe   : > { %p1402_p6 = por %p161_p3, %p47_p0  ;;  %s1320_s30 = smov [#allocation5]  }
   0xf   : > { %s1583_s27 = scalar_select %p1397_p4, 1, 0 }
  0x10   : > { %s1584_s28 = scalar_select %p1402_p6, 1, 0 }
  0x11   : > { %p1407_p8 = pnand %p903_p5, %p194_p7  ;;  %s206_s7 = sshll.u32 %s1320_s30, 4  ;;  %s207_s7 = int_to_ptr.vmem [resolvable:$true] %s206_s7 }
  0x12   : > { %s1321_s9 = smov [#allocation7]   ;;  %s1151_s11 = scalar_lea.vmem %s207_s7, 3072 }
  0x13   : > { %s1585_s29 = scalar_select %p1407_p8, 1, 0 }
  0x14   : > { %p1027_p9 = pneg %p1407_p8  ;;  %s222_s10 = sshll.u32 %s1321_s9, 4  ;;  %s223_s10 = int_to_ptr.vmem [resolvable:$true] %s222_s10 }
  0x15   : > { %p1152_p13 = scmp.ne.s32.totalorder %s207_s7, %s1151_s11  ;;  %p1159_p5 = scmp.lt.s32.totalorder %s207_s7, %s207_s7 }
  0x16   : > { %p1416_p11 = pnand %p1027_p9, %p1578_p1  ;;  %p1160_p7 = scmp.lt.s32.totalorder %s1151_s11, %s1151_s11 }
  0x18   : > { %p1142_p12 = pneg %p1416_p11  ;;  %p1161_p10 = por %p1160_p7, %p1159_p5 }
  0x1a   : > { %p1154_p0 = pnand %p1152_p13, %p1142_p12 }
  0x1c   : > { %p1155_p3 = pneg %p1154_p0 }
  0x1e   : > { %p1162_p9 = pnand %p1161_p10, %p1155_p3 }
  0x20   : > { %1165 = shalt.err (!%p1162_p9)
}
  0x21   : > { %s1322_s12 = smov 192   ;;  %s1323_s13 = smov 12  }
  0x22   : > { %s1587_s1 = sld [smem:[#allocation15_spill]]  ;;  %s1177_s16 = scalar_lea.vmem %s223_s10, 2048 }
  0x23   : > { %p1178_p1 = scmp.ne.s32.totalorder %s223_s10, %s1177_s16  ;;  %p1185_p2 = scmp.lt.s32.totalorder %s223_s10, %s223_s10 }
  0x24   : > { %p1186_p6 = scmp.lt.s32.totalorder %s1177_s16, %s1177_s16 }
  0x25   : > { %p1180_p13 = pnand %p1178_p1, %p1142_p12 }
  0x26   : > { %p1187_p5 = por %p1186_p6, %p1185_p2 }
  0x27   : > { %p1181_p0 = pneg %p1180_p13 }
  0x28   : > { %1030 = dma.hbm_to_vmem [thread:$0]  (!%p1416_p11), %s1587_s1, 3072, %s207_s7, [#allocation6], %s1322_s12, %s1322_s12, %s1323_s13  }
  0x29   : > { %p1188_p10 = pnand %p1187_p5, %p1181_p0 }
  0x2b   : > { %1191 = shalt.err (!%p1188_p10)
}
  0x2c   : > { %s1324_s17 = smov 64   ;;  %s1325_s18 = smov 4  }
  0x2d   : > { %1033 = dma.hbm_to_vmem [thread:$0]  (!%p1416_p11), %s1574_s3, 2048, %s223_s10, [#allocation6], %s1324_s17, %s1324_s17, %s1325_s18  }
  0x2e   : > { %s1439_s26 = sadd.s32 1, %s1318_s24   ;;  %s34_s7 = sadd.s32 1, %s1314_s23 }
  0x2f   : > { %s31_s30 = ssub.s32 %s1318_s24, %s1439_s26  ;;  %p41_p2 = scmp.ne.s32.totalorder %s1314_s23, %s1310_s22 }
  0x30   : > { %p32_p1 = scmp.eq.s32.totalorder %s31_s30, 0  ;;  %p42_p6 = scmp.eq.s32.totalorder %s1318_s24, 0 }
  0x31   : > { %p1588_p3 = scmp.eq.s32.totalorder %s1388_s25, 1  ;;  %p1047_p9 = scmp.lt.s32.totalorder %s1318_s24, 2 }
  0x32   : > { %s1448_s9 = scalar_select %p32_p1, %s1314_s23, %s34_s7  }
  0x33   : > { %p43_p12 = por %p42_p6, %p41_p2  ;;  %p1452_p7 = por %p1588_p3, %p41_p2 }
  0x34   : > { %s239_s8 = sand.u32 1, %s1314_s23   ;;  %s908_s10 = sshll.u32 %s1318_s24, 7 }
  0x35   : > { %s1589_s11 = scalar_select %p1452_p7, 1, 0 }
  0x36   : > { %s907_s12 = sshll.u32 %s239_s8, 3  ;;  %s1462_s15 = scalar_lea.hbm %s1571_s0, %s908_s10 }
  0x37   : > { %s243_s16 = scalar_lea.vmem [#allocation2], %s907_s12  ;;  %p1464_p11 = pnand %p1047_p9, %p43_p12 }
  0x38   : > { %s250_s17 = sshll.u32 %s243_s16, 4  ;;  %s240_s19 = scalar_lea.sflag [#allocation3], %s239_s8  ;;  %s251_s17 = int_to_ptr.vmem [resolvable:$true] %s250_s17 }
  0x39   : > { %s1192_s20 = scalar_lea.hbm %s1462_s15, 128  ;;  %p1194_p0 = pneg %p1464_p11 }
  0x3a   : > { %p1193_p13 = scmp.ne.s32.totalorder %s1462_s15, %s1192_s20  ;;  %s1197_s10 = scalar_lea.hbm %s1571_s0, 256 }
  0x3b   : > { %p1198_p1 = scmp.lt.s32.totalorder %s1462_s15, %s1571_s0  ;;  %p1199_p2 = scmp.lt.s32.totalorder %s1197_s10, %s1192_s20 }
  0x3c   : > { %p1195_p5 = pnand %p1194_p0, %p1193_p13 }
  0x3d   : > { %p1200_p6 = por %p1199_p2, %p1198_p1 }
  0x3e   : > { %p1196_p10 = pneg %p1195_p5 }
  0x40   : > { %p1201_p12 = pnand %p1200_p6, %p1196_p10 }
  0x42   : > { %1204 = shalt.err (!%p1201_p12)
}
  0x43   : > { %s1205_s14 = scalar_lea.vmem %s251_s17, 128  ;;  %s1326_s8 = smov [#allocation2]  }
  0x44   : > { %p1206_p3 = scmp.ne.s32.totalorder %s251_s17, %s1205_s14  ;;  %s1210_s16 = sshll.u32 %s1326_s8, 4  ;;  %s1211_s16 = int_to_ptr.vmem [resolvable:$false] %s1210_s16 }
  0x45   : > { %s1212_s1 = scalar_lea.vmem %s1211_s16, 256  ;;  %p1213_p13 = scmp.lt.s32.totalorder %s251_s17, %s1211_s16 }
  0x46   : > { %p1208_p9 = pnand %p1206_p3, %p1194_p0  ;;  %p1214_p5 = scmp.lt.s32.totalorder %s1212_s1, %s1205_s14 }
  0x48   : > { %p1209_p7 = pneg %p1208_p9  ;;  %p1215_p4 = por %p1214_p5, %p1213_p13 }
  0x4a   : > { %p1216_p8 = pnand %p1215_p4, %p1209_p7 }
  0x4c   : > { %1219 = shalt.err (!%p1216_p8)
}
  0x4d   : > { %1037 = dma.hbm_to_vmem [thread:$0]  (!%p1464_p11), %s1462_s15, 128, %s251_s17, %s240_s19  }
  0x4e   : > { %p1591_p10 = scmp.ne.s32.totalorder %s1585_s29, 0 }
  0x4f   : > { %s1485_s20 = sand.u32 (!%p1591_p10), 1, %s1310_s22   ;;  %p1592_p4 = scmp.ne.s32.totalorder (!%p1591_p10), %s1583_s27, 0 }
  0x50   : > { %259 = sbr.rel (%p1591_p10) target bundleno = 536 (0x218), region = 40  ;;  %s1488_s30 = sshll.u32 (!%p1591_p10), %s1485_s20, 3 }
  0x51   : > { %s262_s1 = scalar_lea.sflag (!%p1591_p10), [#allocation3], %s1485_s20  ;;  %s265_s7 = scalar_lea.vmem (!%p1591_p10), [#allocation2], %s1488_s30 }
  0x55   : > { %1289 = dma.done.wait (%p1592_p4), %s262_s1, 128  }
  0x56   : > { %1291 = vsyncadd (%p1592_p4), %s262_s1, 4294967168  ;;  %p1593_p8 = scmp.eq.s32.totalorder %s1388_s25, 0 }
  0x58   : > { %1293 = dma.done.wait (%p1593_p8), [#allocation6], 5120   ;;  %p1594_p7 = pmov %p1593_p8 }
  0x59   : > { %v1327_v0 = vmov 0.0   ;;  %vm1328_vm0 = vmmov 0   ;;  %v1329_v1 = vmov 0   ;;  %v1092_v2 = vld [vmem:[#allocation5 + $0xac] ss:$12 sps:$4 sm:$0xff]   ;;  %v1126_v30 = vld [vmem:[#allocation7 + $0x70] sm:$0xff]   ;;  %v344_v44 = vlaneseq }
  0x5a   : > { %1295 = vsyncadd (%p1594_p7), [#allocation6], 4294962176  ;;  %993 = vmatprep.subr.bf16.mxu1 %v1327_v0  ;;  %1009 = vmatprep.mubr.msk.bf16.mxu1 %vm1328_vm0, %v1327_v0  ;;  %v1094_v3 = vld [vmem:[#allocation5 + $0xb0] ss:$12 sps:$4 sm:$0xff]   ;;  %v1095_v4 = vld [vmem:[#allocation5 + $0xa8] ss:$12 sps:$4 sm:$0xff]  }
  0x5b   : > { %519 = vmatprep.mubr.bf16.mxu0 %v1329_v1  ;;  %487 = vmatprep.subr.bf16.mxu0 %v1092_v2  ;;  %v1096_v5 = vld [vmem:[#allocation5 + $0x94] ss:$12 sps:$4 sm:$0xff]   ;;  %v1098_v6 = vld [vmem:[#allocation5 + $0x98] ss:$12 sps:$4 sm:$0xff]   ;;  %v1099_v7 = vld [vmem:[#allocation5 + $0x90] ss:$12 sps:$4 sm:$0xff]  }
  0x5c   : > { %994 = vmatpush3.bf16.msra.mxu1 %v1094_v3  ;;  %488 = vmatpush1.bf16.msra.mxu0 %v1095_v4  ;;  %v1100_v8 = vld [vmem:[#allocation5 + $0x7c] ss:$12 sps:$4 sm:$0xff]   ;;  %v1102_v9 = vld [vmem:[#allocation5 + $0x80] ss:$12 sps:$4 sm:$0xff]   ;;  %v1103_v10 = vld [vmem:[#allocation5 + $0x78] ss:$12 sps:$4 sm:$0xff]  }
  0x5d   : > { %995 = vmatprep.subr.bf16.mxu1 %v1327_v0  ;;  %489 = vmatprep.subr.bf16.mxu0 %v1096_v5  ;;  %v1104_v11 = vld [vmem:[#allocation5 + $0x64] ss:$12 sps:$4 sm:$0xff]   ;;  %v1106_v12 = vld [vmem:[#allocation5 + $0x68] ss:$12 sps:$4 sm:$0xff]   ;;  %v1107_v13 = vld [vmem:[#allocation5 + $0x60] ss:$12 sps:$4 sm:$0xff]  }
  0x5e   : > { %v1108_v14 = vld [vmem:[#allocation5 + $0x4c] ss:$12 sps:$4 sm:$0xff]   ;;  %v1110_v15 = vld [vmem:[#allocation5 + $0x50] ss:$12 sps:$4 sm:$0xff]   ;;  %v1111_v16 = vld [vmem:[#allocation5 + $0x48] ss:$12 sps:$4 sm:$0xff]  }
  0x5f   : > { %v1112_v17 = vld [vmem:[#allocation5 + $0x34] ss:$12 sps:$4 sm:$0xff]   ;;  %v1114_v18 = vld [vmem:[#allocation5 + $0x38] ss:$12 sps:$4 sm:$0xff]   ;;  %v1115_v19 = vld [vmem:[#allocation5 + $0x30] ss:$12 sps:$4 sm:$0xff]  }
  0x60   : > { %996 = vmatpush3.bf16.msra.mxu1 %v1098_v6  ;;  %490 = vmatpush1.bf16.msra.mxu0 %v1099_v7  ;;  %v1116_v20 = vld [vmem:[#allocation5 + $0x1c] ss:$12 sps:$4 sm:$0xff]   ;;  %v1118_v21 = vld [vmem:[#allocation5 + $0x20] ss:$12 sps:$4 sm:$0xff]   ;;  %v1119_v22 = vld [vmem:[#allocation5 + $0x18] ss:$12 sps:$4 sm:$0xff]  }
  0x61   : > { %997 = vmatprep.subr.bf16.mxu1 %v1327_v0  ;;  %491 = vmatprep.subr.bf16.mxu0 %v1100_v8  ;;  %v1120_v23 = vld [vmem:[#allocation5 + $0x4] ss:$12 sps:$4 sm:$0xff]   ;;  %v1122_v24 = vld [vmem:[#allocation5 + $0x8] ss:$12 sps:$4 sm:$0xff]   ;;  %v1123_v26 = vld [vmem:[#allocation5] ss:$12 sps:$4 sm:$0xff]  }
  0x62   : > { %v308_v25 = vld [vmem:[%s265_s7] sm:$0xff]  ;;  %v1128_v32 = vld [vmem:[#allocation7 + $0x68] sm:$0xff]   ;;  %v1130_v34 = vld [vmem:[#allocation7 + $0x60] sm:$0xff]   ;;  %v345_v45 = vshrl.u32 %v344_v44, 7  ;;  %s299_s15 = scalar_lea.vmem [#allocation8], %s1488_s30  ;;  %s958_s17 = sshll.u32 %s1388_s25, 7 }
  0x63   : > { %v1124_v27 = vld [vmem:[#allocation7 + $0x78] sm:$0xff]   ;;  %v309_v28 = vpack.c.bf16 %v308_v25, %v308_v25  ;;  %v1127_v31 = vld [vmem:[#allocation7 + $0x30] sm:$0xff]   ;;  %v1129_v33 = vld [vmem:[#allocation7 + $0x28] sm:$0xff]   ;;  %s766_s10 = scalar_lea.hbm %s1576_s5, %s958_s17  ;;  %s768_s13 = sshll.u32 %s299_s15, 4  ;;  %s769_s13 = int_to_ptr.vmem [resolvable:$true] %s768_s13 }
  0x64   : > { %998 = vmatpush3.bf16.msra.mxu1 %v1102_v9  ;;  %492 = vmatpush1.bf16.msra.mxu0 %v1103_v10  ;;  %v1125_v29 = vld [vmem:[#allocation7 + $0x38] sm:$0xff]   ;;  %v1131_v35 = vld [vmem:[#allocation7 + $0x20] sm:$0xff]   ;;  %v1134_v38 = vld [vmem:[#allocation7 + $0x50] sm:$0xff]   ;;  %v354_v46 = vsub.s32 2, %v345_v45  ;;  %v346_v48 = vsub.s32 0, %v345_v45  ;;  %v350_v49 = vsub.s32 1, %v345_v45 }
  0x65   : > { %999 = vmatprep.subr.bf16.mxu1 %v1327_v0  ;;  %493 = vmatprep.subr.bf16.mxu0 %v1104_v11  ;;  %v1132_v36 = vld [vmem:[#allocation7 + $0x58] sm:$0xff]   ;;  %v1135_v39 = vld [vmem:[#allocation7 + $0x10] sm:$0xff]   ;;  %v1136_v40 = vld [vmem:[#allocation7 + $0x48] sm:$0xff]   ;;  %s750_s12 = scalar_lea.sflag [#allocation4], %s1485_s20  ;;  %s1220_s14 = scalar_lea.vmem %s769_s13, 128 }
  0x66   : > { %v1133_v37 = vld [vmem:[#allocation7 + $0x18] sm:$0xff]   ;;  %v1137_v41 = vld [vmem:[#allocation7 + $0x8] sm:$0xff]   ;;  %v1138_v42 = vld [vmem:[#allocation7 + $0x40] sm:$0xff]   ;;  %p1221_p11 = scmp.ne.s32.totalorder %s769_s13, %s1220_s14  ;;  %p1595_p0 = scmp.ne.s32.totalorder %s1589_s11, 0 }
  0x67   : > { %v1139_v43 = vld [vmem:[#allocation7] sm:$0xff]   ;;  %v342_v47 = vld [vmem:[%s1573_s2] sm:$0x7]  ;;  %s1330_s8 = smov [#allocation8]  }
  0x68   : > { %1000 = vmatpush3.bf16.msra.mxu1 %v1106_v12  ;;  %494 = vmatpush1.bf16.msra.mxu0 %v1107_v13  ;;  %v355_v50 = vrot.slane %v342_v47, %v354_v46  ;;  %v347_v51 = vrot.slane %v342_v47, %v346_v48  ;;  %v351_v53 = vrot.slane %v342_v47, %v350_v49  ;;  %p1222_p1 = pnand %p1221_p11, %p1595_p0  ;;  %s1224_s16 = sshll.u32 %s1330_s8, 4  ;;  %s1225_s16 = int_to_ptr.vmem [resolvable:$false] %s1224_s16 }
  0x69   : > { %1001 = vmatprep.subr.bf16.mxu1 %v1327_v0  ;;  %495 = vmatprep.subr.bf16.mxu0 %v1108_v14  ;;  %s1226_s1 = scalar_lea.vmem %s1225_s16, 256  ;;  %p1227_p6 = scmp.lt.s32.totalorder %s769_s13, %s1225_s16 }
  0x6a   : > { %p1223_p2 = pneg %p1222_p1  ;;  %p1228_p12 = scmp.lt.s32.totalorder %s1226_s1, %s1220_s14 }
  0x6c   : > { %1002 = vmatpush3.bf16.msra.mxu1 %v1110_v15  ;;  %496 = vmatpush1.bf16.msra.mxu0 %v1111_v16  ;;  %p1229_p3 = por %p1228_p12, %p1227_p6 }
  0x6d   : > { %1003 = vmatprep.subr.bf16.mxu1 %v1327_v0  ;;  %497 = vmatprep.subr.bf16.mxu0 %v1112_v17 }
  0x6e   : > { %p1230_p9 = pnand %p1229_p3, %p1223_p2 }
  0x70   : > { %1004 = vmatpush3.bf16.msra.mxu1 %v1114_v18  ;;  %498 = vmatpush1.bf16.msra.mxu0 %v1115_v19 }
  0x71   : > { %1005 = vmatprep.subr.bf16.mxu1 %v1327_v0  ;;  %499 = vmatprep.subr.bf16.mxu0 %v1116_v20 }
  0x74   : > { %1006 = vmatpush3.bf16.msra.mxu1 %v1118_v21  ;;  %500 = vmatpush1.bf16.msra.mxu0 %v1119_v22 }
  0x75   : > { %1007 = vmatprep.subr.bf16.mxu1 %v1327_v0  ;;  %501 = vmatprep.subr.bf16.mxu0 %v1120_v23 }
  0x78   : > { %1008 = vmatpush3.bf16.msra.mxu1 %v1122_v24  ;;  %502 = vmatpush1.bf16.msra.mxu0 %v1123_v26 }
  0x79   : > { %971 = vmatprep.subr.bf16.mxu0 %v1124_v27 }
  0x7b   : > { %1010 = vmatmul.mubr.bf16.vlgmr.msra.gmra.mxu1 %v309_v28  ;;  %520 = vmatmul.mubr.bf16.vlgmr.msra.gmra.mxu0 %v309_v28 }
  0x7c   : > { %972 = vmatpush3.bf16.msra.mxu0 %v1125_v29 }
  0x7d   : > { %973 = vmatprep.subr.bf16.mxu0 %v1126_v30 }
  0x80   : > { %974 = vmatpush3.bf16.msra.mxu0 %v1127_v31 }
  0x81   : > { %975 = vmatprep.subr.bf16.mxu0 %v1128_v32 }
  0x84   : > { %976 = vmatpush3.bf16.msra.mxu0 %v1129_v33 }
  0x85   : > { %977 = vmatprep.subr.bf16.mxu0 %v1130_v34 }
  0x88   : > { %978 = vmatpush3.bf16.msra.mxu0 %v1131_v35 }
  0x89   : > { %979 = vmatprep.subr.bf16.mxu0 %v1132_v36 }
  0x8c   : > { %980 = vmatpush3.bf16.msra.mxu0 %v1133_v37 }
  0x8d   : > { %981 = vmatprep.subr.bf16.mxu0 %v1134_v38 }
  0x90   : > { %982 = vmatpush3.bf16.msra.mxu0 %v1135_v39 }
  0x91   : > { %983 = vmatprep.subr.bf16.mxu0 %v1136_v40 }
  0x94   : > { %984 = vmatpush3.bf16.msra.mxu0 %v1137_v41 }
  0x95   : > { %985 = vmatprep.subr.bf16.mxu0 %v1138_v42 }
  0x98   : > { %986 = vmatpush3.bf16.msra.mxu0 %v1139_v43 }
 0x13b   : > { %v562_v52 = vpop.f32.mrf.mxu1  ;;  %v521_v55 = vpop.f32.mrf.mxu0 }
 0x13c   : > { %v563_v54 = vadd.f32 %v562_v52, %v355_v50  ;;  %v522_v56 = vadd.f32 %v521_v55, %v347_v51 }
 0x13d   : > { %v1011_v57 = vpop.f32.mrf.mxu1  ;;  %v523_v59 = vpop.f32.mrf.mxu0 }
 0x13e   : > { %v570_v58 = vmax.f32 %v563_v54, 0.0  ;;  %568 = vst [vmem:[%s299_s15] sm:$0xff] %v522_v56  ;;  %v524_v60 = vadd.f32 %v523_v59, %v351_v53 }
 0x13f   : > { %v565_v61 = vpop.f32.mrf.mxu1  ;;  %v525_v63 = vpop.f32.mrf.mxu0 }
 0x140   : > { %v572_v62 = vpack.c.bf16 %v570_v58, %v570_v58  ;;  %v569_v0 = vmax.f32 %v524_v60, 0.0 }
 0x141   : > { %v1012_v1 = vpop.f32.mrf.mxu1  ;;  %v526_v2 = vpop.f32.mrf.mxu0 }
 0x142   : > { %740 = vmatprep.mubr.bf16.mxu0 %v572_v62  ;;  %v571_v3 = vpack.c.bf16 %v569_v0, %v569_v0 }
 0x144   : > { %741 = vmatmul.mubr.bf16.vlgmr.msra.gmra.mxu0 %v571_v3 }
 0x145   : > { %1233 = shalt.err (!%p1230_p9)
}
 0x146   : > { %s1234_s7 = scalar_lea.hbm %s766_s10, 128  ;;  %s1238_s15 = scalar_lea.hbm %s1576_s5, 256 }
 0x147   : > { %p1235_p13 = scmp.ne.s32.totalorder %s766_s10, %s1234_s7  ;;  %p1239_p4 = scmp.lt.s32.totalorder %s766_s10, %s1576_s5 }
 0x148   : > { %p1240_p8 = scmp.lt.s32.totalorder %s1238_s15, %s1234_s7 }
 0x149   : > { %p1236_p5 = pnand %p1235_p13, %p1595_p0 }
 0x14a   : > { %p1241_p7 = por %p1240_p8, %p1239_p4 }
 0x14b   : > { %p1237_p10 = pneg %p1236_p5 }
 0x14d   : > { %p1242_p11 = pnand %p1241_p7, %p1237_p10 }
 0x14f   : > { %1245 = shalt.err (!%p1242_p11)
}
 0x150   : > { %1023 = dma.vmem_to_hbm [thread:$0]  (%p1595_p0), %s769_s13, 128, %s766_s10, %s750_s12   ;;  %v939_v5 = vld [vmem:[%s1575_s4] ss:$0 sm:$0xff] }
 0x151   : > { %s306_s16 = scalar_lea.vmem [#allocation9], %s1488_s30  ;;  %s1534_s29 = scalar_lea.hbm %s1577_s6, %s958_s17 }
 0x152   : > { %s781_s1 = sshll.u32 %s306_s16, 4  ;;  %s755_s10 = scalar_lea.sflag [#allocation10], %s1485_s20  ;;  %s782_s1 = int_to_ptr.vmem [resolvable:$true] %s781_s1 }
 0x153   : > { %s1246_s13 = scalar_lea.vmem %s782_s1, 128  ;;  %s1331_s30 = smov [#allocation9]  }
 0x154   : > { %p1247_p1 = scmp.ne.s32.totalorder %s782_s1, %s1246_s13  ;;  %s1250_s12 = sshll.u32 %s1331_s30, 4  ;;  %s1251_s12 = int_to_ptr.vmem [resolvable:$false] %s1250_s12 }
 0x155   : > { %s1252_s15 = scalar_lea.vmem %s1251_s12, 256  ;;  %p1253_p12 = scmp.lt.s32.totalorder %s782_s1, %s1251_s12 }
 0x156   : > { %p1248_p2 = pnand %p1247_p1, %p1595_p0  ;;  %p1254_p3 = scmp.lt.s32.totalorder %s1252_s15, %s1246_s13 }
 0x158   : > { %p1249_p6 = pneg %p1248_p2  ;;  %p1255_p9 = por %p1254_p3, %p1253_p12 }
 0x15a   : > { %p1256_p13 = pnand %p1255_p9, %p1249_p6 }
 0x204   : > { %v987_v4 = vpop.f32.mrf.mxu0 }
 0x206   : > { %v988_v6 = vpop.f32.mrf.mxu0 }
 0x207   : > { %v989_v7 = vadd.f32 %v988_v6, %v987_v4 }
 0x208   : > { %v990_v8 = vpop.f32.mrf.mxu0 }
 0x209   : > { %v743_v9 = vadd.f32 %v989_v7, %v939_v5 }
 0x20a   : > { %v991_v10 = vpop.f32.mrf.mxu0 }
 0x20b   : > { %748 = vst [vmem:[%s306_s16] sm:$0xff] %v743_v9 }
 0x20c   : > { %1259 = shalt.err (!%p1256_p13)
}
 0x20d   : > { %s1260_s25 = scalar_lea.hbm %s1534_s29, 128  ;;  %s1264_s18 = scalar_lea.hbm %s1577_s6, 256 }
 0x20e   : > { %p1261_p5 = scmp.ne.s32.totalorder %s1534_s29, %s1260_s25  ;;  %p1265_p8 = scmp.lt.s32.totalorder %s1534_s29, %s1577_s6 }
 0x20f   : > { %p1266_p7 = scmp.lt.s32.totalorder %s1264_s18, %s1260_s25 }
 0x210   : > { %p1262_p10 = pnand %p1261_p5, %p1595_p0 }
 0x211   : > { %p1267_p11 = por %p1266_p7, %p1265_p8 }
 0x212   : > { %p1263_p4 = pneg %p1262_p10 }
 0x214   : > { %p1268_p1 = pnand %p1267_p11, %p1263_p4 }
 0x216   : > { %1271 = shalt.err (!%p1268_p1)
}
 0x217   : > { %1024 = dma.vmem_to_hbm [thread:$0]  (%p1595_p0), %s782_s1, 128, %s1534_s29, %s755_s10  }
 0x218 PF: > { %s793_s8 = sand.u32 1, %s1306_s21   ;;  %p1596_p2 = scmp.ne.s32.totalorder %s1584_s28, 0 }
 0x219   : > { %p1597_p6 = scmp.ge.s32.totalorder %s1318_s24, 2  ;;  %s794_s16 = scalar_lea.sflag [#allocation4], %s793_s8 }
 0x21b   : > { %p1039_p12 = pnand %p1597_p6, %p1596_p2 }
 0x21d   : > { %p1040_p3 = pneg %p1039_p12 }
 0x21f   : > { %1297 = dma.done.wait (%p1040_p3), %s794_s16, 128  }
 0x220   : > { %1299 = vsyncadd (%p1040_p3), %s794_s16, 4294967168  ;;  %s803_s7 = scalar_lea.sflag [#allocation10], %s793_s8 }
 0x221   : > { %1301 = dma.done.wait (%p1040_p3), %s803_s7, 128  }
 0x222   : > { %1303 = vsyncadd (%p1040_p3), %s803_s7, 4294967168  ;;  %p24_p0 = scmp.ge.s32.totalorder %s1439_s26, 4   ;;  %s1598_s21 = smov %s1310_s22 }
 0x223   : > { %s1599_s22 = smov %s1314_s23  ;;  %s1600_s23 = smov %s1448_s9 }
 0x224   : > { %s1601_s24 = smov %s1439_s26  ;;  %26 = sbr.rel (!%p24_p0) target bundleno = 10 (0xa), region = 110 }
 0x229   :  { %808 = vsyncpa [#allocation3], 1 }
 0x22a   :  { %810 = vsyncpa [#allocation3 + $0x1], 1 }
 0x22b   :  { %811 = vsyncpa [#allocation6], 1 }
 0x22c   :  { %812 = vsyncpa [#allocation4], 1 }
 0x22d   :  { %814 = vsyncpa [#allocation4 + $0x1], 1 }
 0x22e   :  { %815 = vsyncpa [#allocation10], 1 }
 0x22f   :  { %817 = vsyncpa [#allocation10 + $0x1], 1 }

// kernel: tpu_custom_call.1
= control target key start
LH: loop header
LB: loop body
LE: loop exit
PB: predicated region body
PF: predicated region fallthrough
CT: control target
= control target key end

     0   :  { %s1571_s0 = inlined_call_operand.hbm [shape: f32[16,128], index: 0, kind: input, shape index: {}]   ;;  %s1572_s1 = inlined_call_operand.hbm [shape: bf16[128,384], index: 1, kind: input, shape index: {}]   ;;  %s1573_s2 = inlined_call_operand.vmem [shape: f32[1,384], index: 2, kind: input, shape index: {}]   ;;  %s1574_s3 = inlined_call_operand.hbm [shape: bf16[256,128], index: 3, kind: input, shape index: {}]   ;;  %s1575_s4 = inlined_call_operand.vmem [shape: f32[1,128], index: 4, kind: input, shape index: {}]   ;;  %s1576_s5 = inlined_call_operand.hbm [shape: f32[16,128], index: 5, kind: output, shape index: {0}]   ;;  %s1577_s6 = inlined_call_operand.hbm [shape: f32[16,128], index: 6, kind: output, shape index: {1}]  }
   0x1   :  { %1582 = sst [smem:[#allocation15_spill]] %s1572_s1 }
   0x2   :  { %12 = vsyncpa [#allocation3], 0 }
   0x3   :  { %14 = vsyncpa [#allocation3 + $0x1], 0 }
   0x4   :  { %15 = vsyncpa [#allocation6], 0 }
   0x5   :  { %16 = vsyncpa [#allocation4], 0 }
   0x6   :  { %18 = vsyncpa [#allocation4 + $0x1], 0 }
   0x7   :  { %19 = vsyncpa [#allocation10], 0 }
   0x8   :  { %21 = vsyncpa [#allocation10 + $0x1], 0  ;;  %s1367_s21 = smov 0   ;;  %s1369_s22 = smov 0  }
   0x9   :  { %s1371_s23 = smov 0   ;;  %s1373_s24 = smov 0  }
   0xa LB: > { %s1388_s25 = sadd.s32 4294967295, %s1318_s24   ;;  %s902_s26 = sadd.s32 4294967294, %s1318_s24   ;;  %s1318_s24 = sphi %s1373_s24, %s1601_s24   ;;  %s1314_s23 = sphi %s1371_s23, %s1600_s23   ;;  %s1310_s22 = sphi %s1369_s22, %s1599_s22   ;;  %s1306_s21 = sphi %s1367_s21, %s1598_s21  }
   0xb   : > { %p47_p0 = scmp.ne.s32.totalorder %s1310_s22, %s1306_s21  ;;  %p1578_p1 = scmp.eq.s32.totalorder %s1388_s25, 0 }
   0xc   : > { %p161_p3 = scmp.eq.s32.totalorder %s902_s26, 1  ;;  %p903_p5 = scmp.ge.s32.totalorder %s1318_s24, 1 }
   0xd   : > { %p1397_p4 = por %p1578_p1, %p47_p0  ;;  %p194_p7 = scmp.lt.s32.totalorder %s1318_s24, 3 }
   0xe   : > { %p1402_p6 = por %p161_p3, %p47_p0  ;;  %s1320_s30 = smov [#allocation5]  }
   0xf   : > { %s1583_s27 = scalar_select %p1397_p4, 1, 0 }
  0x10   : > { %s1584_s28 = scalar_select %p1402_p6, 1, 0 }
  0x11   : > { %p1407_p8 = pnand %p903_p5, %p194_p7  ;;  %s206_s7 = sshll.u32 %s1320_s30, 4  ;;  %s207_s7 = int_to_ptr.vmem [resolvable:$true] %s206_s7 }
  0x12   : > { %s1321_s9 = smov [#allocation7]   ;;  %s1151_s11 = scalar_lea.vmem %s207_s7, 3072 }
  0x13   : > { %s1585_s29 = scalar_select %p1407_p8, 1, 0 }
  0x14   : > { %p1027_p9 = pneg %p1407_p8  ;;  %s222_s10 = sshll.u32 %s1321_s9, 4  ;;  %s223_s10 = int_to_ptr.vmem [resolvable:$true] %s222_s10 }
  0x15   : > { %p1152_p13 = scmp.ne.s32.totalorder %s207_s7, %s1151_s11  ;;  %p1159_p5 = scmp.lt.s32.totalorder %s207_s7, %s207_s7 }
  0x16   : > { %p1416_p11 = pnand %p1027_p9, %p1578_p1  ;;  %p1160_p7 = scmp.lt.s32.totalorder %s1151_s11, %s1151_s11 }
  0x18   : > { %p1142_p12 = pneg %p1416_p11  ;;  %p1161_p10 = por %p1160_p7, %p1159_p5 }
  0x1a   : > { %p1154_p0 = pnand %p1152_p13, %p1142_p12 }
  0x1c   : > { %p1155_p3 = pneg %p1154_p0 }
  0x1e   : > { %p1162_p9 = pnand %p1161_p10, %p1155_p3 }
  0x20   : > { %1165 = shalt.err (!%p1162_p9)
}
  0x21   : > { %s1322_s12 = smov 192   ;;  %s1323_s13 = smov 12  }
  0x22   : > { %s1587_s1 = sld [smem:[#allocation15_spill]]  ;;  %s1177_s16 = scalar_lea.vmem %s223_s10, 2048 }
  0x23   : > { %p1178_p1 = scmp.ne.s32.totalorder %s223_s10, %s1177_s16  ;;  %p1185_p2 = scmp.lt.s32.totalorder %s223_s10, %s223_s10 }
  0x24   : > { %p1186_p6 = scmp.lt.s32.totalorder %s1177_s16, %s1177_s16 }
  0x25   : > { %p1180_p13 = pnand %p1178_p1, %p1142_p12 }
  0x26   : > { %p1187_p5 = por %p1186_p6, %p1185_p2 }
  0x27   : > { %p1181_p0 = pneg %p1180_p13 }
  0x28   : > { %1030 = dma.hbm_to_vmem [thread:$0]  (!%p1416_p11), %s1587_s1, 3072, %s207_s7, [#allocation6], %s1322_s12, %s1322_s12, %s1323_s13  }
  0x29   : > { %p1188_p10 = pnand %p1187_p5, %p1181_p0 }
  0x2b   : > { %1191 = shalt.err (!%p1188_p10)
}
  0x2c   : > { %s1324_s17 = smov 64   ;;  %s1325_s18 = smov 4  }
  0x2d   : > { %1033 = dma.hbm_to_vmem [thread:$0]  (!%p1416_p11), %s1574_s3, 2048, %s223_s10, [#allocation6], %s1324_s17, %s1324_s17, %s1325_s18  }
  0x2e   : > { %s1439_s26 = sadd.s32 1, %s1318_s24   ;;  %s34_s7 = sadd.s32 1, %s1314_s23 }
  0x2f   : > { %s31_s30 = ssub.s32 %s1318_s24, %s1439_s26  ;;  %p41_p2 = scmp.ne.s32.totalorder %s1314_s23, %s1310_s22 }
  0x30   : > { %p32_p1 = scmp.eq.s32.totalorder %s31_s30, 0  ;;  %p42_p6 = scmp.eq.s32.totalorder %s1318_s24, 0 }
  0x31   : > { %p1588_p3 = scmp.eq.s32.totalorder %s1388_s25, 1  ;;  %p1047_p9 = scmp.lt.s32.totalorder %s1318_s24, 2 }
  0x32   : > { %s1448_s9 = scalar_select %p32_p1, %s1314_s23, %s34_s7  }
  0x33   : > { %p43_p12 = por %p42_p6, %p41_p2  ;;  %p1452_p7 = por %p1588_p3, %p41_p2 }
  0x34   : > { %s239_s8 = sand.u32 1, %s1314_s23   ;;  %s908_s10 = sshll.u32 %s1318_s24, 7 }
  0x35   : > { %s1589_s11 = scalar_select %p1452_p7, 1, 0 }
  0x36   : > { %s907_s12 = sshll.u32 %s239_s8, 3  ;;  %s1462_s15 = scalar_lea.hbm %s1571_s0, %s908_s10 }
  0x37   : > { %s243_s16 = scalar_lea.vmem [#allocation2], %s907_s12  ;;  %p1464_p11 = pnand %p1047_p9, %p43_p12 }
  0x38   : > { %s250_s17 = sshll.u32 %s243_s16, 4  ;;  %s240_s19 = scalar_lea.sflag [#allocation3], %s239_s8  ;;  %s251_s17 = int_to_ptr.vmem [resolvable:$true] %s250_s17 }
  0x39   : > { %s1192_s20 = scalar_lea.hbm %s1462_s15, 128  ;;  %p1194_p0 = pneg %p1464_p11 }
  0x3a   : > { %p1193_p13 = scmp.ne.s32.totalorder %s1462_s15, %s1192_s20  ;;  %s1197_s10 = scalar_lea.hbm %s1571_s0, 256 }
  0x3b   : > { %p1198_p1 = scmp.lt.s32.totalorder %s1462_s15, %s1571_s0  ;;  %p1199_p2 = scmp.lt.s32.totalorder %s1197_s10, %s1192_s20 }
  0x3c   : > { %p1195_p5 = pnand %p1194_p0, %p1193_p13 }
  0x3d   : > { %p1200_p6 = por %p1199_p2, %p1198_p1 }
  0x3e   : > { %p1196_p10 = pneg %p1195_p5 }
  0x40   : > { %p1201_p12 = pnand %p1200_p6, %p1196_p10 }
  0x42   : > { %1204 = shalt.err (!%p1201_p12)
}
  0x43   : > { %s1205_s14 = scalar_lea.vmem %s251_s17, 128  ;;  %s1326_s8 = smov [#allocation2]  }
  0x44   : > { %p1206_p3 = scmp.ne.s32.totalorder %s251_s17, %s1205_s14  ;;  %s1210_s16 = sshll.u32 %s1326_s8, 4  ;;  %s1211_s16 = int_to_ptr.vmem [resolvable:$false] %s1210_s16 }
  0x45   : > { %s1212_s1 = scalar_lea.vmem %s1211_s16, 256  ;;  %p1213_p13 = scmp.lt.s32.totalorder %s251_s17, %s1211_s16 }
  0x46   : > { %p1208_p9 = pnand %p1206_p3, %p1194_p0  ;;  %p1214_p5 = scmp.lt.s32.totalorder %s1212_s1, %s1205_s14 }
  0x48   : > { %p1209_p7 = pneg %p1208_p9  ;;  %p1215_p4 = por %p1214_p5, %p1213_p13 }
  0x4a   : > { %p1216_p8 = pnand %p1215_p4, %p1209_p7 }
  0x4c   : > { %1219 = shalt.err (!%p1216_p8)
}
  0x4d   : > { %1037 = dma.hbm_to_vmem [thread:$0]  (!%p1464_p11), %s1462_s15, 128, %s251_s17, %s240_s19  }
  0x4e   : > { %p1591_p10 = scmp.ne.s32.totalorder %s1585_s29, 0 }
  0x4f   : > { %s1485_s20 = sand.u32 (!%p1591_p10), 1, %s1310_s22   ;;  %p1592_p4 = scmp.ne.s32.totalorder (!%p1591_p10), %s1583_s27, 0 }
  0x50   : > { %259 = sbr.rel (%p1591_p10) target bundleno = 536 (0x218), region = 40  ;;  %s1488_s30 = sshll.u32 (!%p1591_p10), %s1485_s20, 3 }
  0x51   : > { %s262_s1 = scalar_lea.sflag (!%p1591_p10), [#allocation3], %s1485_s20  ;;  %s265_s7 = scalar_lea.vmem (!%p1591_p10), [#allocation2], %s1488_s30 }
  0x55   : > { %1289 = dma.done.wait (%p1592_p4), %s262_s1, 128  }
  0x56   : > { %1291 = vsyncadd (%p1592_p4), %s262_s1, 4294967168  ;;  %p1593_p8 = scmp.eq.s32.totalorder %s1388_s25, 0 }
  0x58   : > { %1293 = dma.done.wait (%p1593_p8), [#allocation6], 5120   ;;  %p1594_p7 = pmov %p1593_p8 }
  0x59   : > { %v1327_v0 = vmov 0.0   ;;  %vm1328_vm0 = vmmov 0   ;;  %v1329_v1 = vmov 0   ;;  %v1092_v2 = vld [vmem:[#allocation5 + $0xac] ss:$12 sps:$4 sm:$0xff]   ;;  %v1126_v30 = vld [vmem:[#allocation7 + $0x70] sm:$0xff]   ;;  %v344_v44 = vlaneseq }
  0x5a   : > { %1295 = vsyncadd (%p1594_p7), [#allocation6], 4294962176  ;;  %993 = vmatprep.subr.bf16.mxu1 %v1327_v0  ;;  %1009 = vmatprep.mubr.msk.bf16.mxu1 %vm1328_vm0, %v1327_v0  ;;  %v1094_v3 = vld [vmem:[#allocation5 + $0xb0] ss:$12 sps:$4 sm:$0xff]   ;;  %v1095_v4 = vld [vmem:[#allocation5 + $0xa8] ss:$12 sps:$4 sm:$0xff]  }
  0x5b   : > { %519 = vmatprep.mubr.bf16.mxu0 %v1329_v1  ;;  %487 = vmatprep.subr.bf16.mxu0 %v1092_v2  ;;  %v1096_v5 = vld [vmem:[#allocation5 + $0x94] ss:$12 sps:$4 sm:$0xff]   ;;  %v1098_v6 = vld [vmem:[#allocation5 + $0x98] ss:$12 sps:$4 sm:$0xff]   ;;  %v1099_v7 = vld [vmem:[#allocation5 + $0x90] ss:$12 sps:$4 sm:$0xff]  }
  0x5c   : > { %994 = vmatpush3.bf16.msra.mxu1 %v1094_v3  ;;  %488 = vmatpush1.bf16.msra.mxu0 %v1095_v4  ;;  %v1100_v8 = vld [vmem:[#allocation5 + $0x7c] ss:$12 sps:$4 sm:$0xff]   ;;  %v1102_v9 = vld [vmem:[#allocation5 + $0x80] ss:$12 sps:$4 sm:$0xff]   ;;  %v1103_v10 = vld [vmem:[#allocation5 + $0x78] ss:$12 sps:$4 sm:$0xff]  }
  0x5d   : > { %995 = vmatprep.subr.bf16.mxu1 %v1327_v0  ;;  %489 = vmatprep.subr.bf16.mxu0 %v1096_v5  ;;  %v1104_v11 = vld [vmem:[#allocation5 + $0x64] ss:$12 sps:$4 sm:$0xff]   ;;  %v1106_v12 = vld [vmem:[#allocation5 + $0x68] ss:$12 sps:$4 sm:$0xff]   ;;  %v1107_v13 = vld [vmem:[#allocation5 + $0x60] ss:$12 sps:$4 sm:$0xff]  }
  0x5e   : > { %v1108_v14 = vld [vmem:[#allocation5 + $0x4c] ss:$12 sps:$4 sm:$0xff]   ;;  %v1110_v15 = vld [vmem:[#allocation5 + $0x50] ss:$12 sps:$4 sm:$0xff]   ;;  %v1111_v16 = vld [vmem:[#allocation5 + $0x48] ss:$12 sps:$4 sm:$0xff]  }
  0x5f   : > { %v1112_v17 = vld [vmem:[#allocation5 + $0x34] ss:$12 sps:$4 sm:$0xff]   ;;  %v1114_v18 = vld [vmem:[#allocation5 + $0x38] ss:$12 sps:$4 sm:$0xff]   ;;  %v1115_v19 = vld [vmem:[#allocation5 + $0x30] ss:$12 sps:$4 sm:$0xff]  }
  0x60   : > { %996 = vmatpush3.bf16.msra.mxu1 %v1098_v6  ;;  %490 = vmatpush1.bf16.msra.mxu0 %v1099_v7  ;;  %v1116_v20 = vld [vmem:[#allocation5 + $0x1c] ss:$12 sps:$4 sm:$0xff]   ;;  %v1118_v21 = vld [vmem:[#allocation5 + $0x20] ss:$12 sps:$4 sm:$0xff]   ;;  %v1119_v22 = vld [vmem:[#allocation5 + $0x18] ss:$12 sps:$4 sm:$0xff]  }
  0x61   : > { %997 = vmatprep.subr.bf16.mxu1 %v1327_v0  ;;  %491 = vmatprep.subr.bf16.mxu0 %v1100_v8  ;;  %v1120_v23 = vld [vmem:[#allocation5 + $0x4] ss:$12 sps:$4 sm:$0xff]   ;;  %v1122_v24 = vld [vmem:[#allocation5 + $0x8] ss:$12 sps:$4 sm:$0xff]   ;;  %v1123_v26 = vld [vmem:[#allocation5] ss:$12 sps:$4 sm:$0xff]  }
  0x62   : > { %v308_v25 = vld [vmem:[%s265_s7] sm:$0xff]  ;;  %v1128_v32 = vld [vmem:[#allocation7 + $0x68] sm:$0xff]   ;;  %v1130_v34 = vld [vmem:[#allocation7 + $0x60] sm:$0xff]   ;;  %v345_v45 = vshrl.u32 %v344_v44, 7  ;;  %s299_s15 = scalar_lea.vmem [#allocation8], %s1488_s30  ;;  %s958_s17 = sshll.u32 %s1388_s25, 7 }
  0x63   : > { %v1124_v27 = vld [vmem:[#allocation7 + $0x78] sm:$0xff]   ;;  %v309_v28 = vpack.c.bf16 %v308_v25, %v308_v25  ;;  %v1127_v31 = vld [vmem:[#allocation7 + $0x30] sm:$0xff]   ;;  %v1129_v33 = vld [vmem:[#allocation7 + $0x28] sm:$0xff]   ;;  %s766_s10 = scalar_lea.hbm %s1576_s5, %s958_s17  ;;  %s768_s13 = sshll.u32 %s299_s15, 4  ;;  %s769_s13 = int_to_ptr.vmem [resolvable:$true] %s768_s13 }
  0x64   : > { %998 = vmatpush3.bf16.msra.mxu1 %v1102_v9  ;;  %492 = vmatpush1.bf16.msra.mxu0 %v1103_v10  ;;  %v1125_v29 = vld [vmem:[#allocation7 + $0x38] sm:$0xff]   ;;  %v1131_v35 = vld [vmem:[#allocation7 + $0x20] sm:$0xff]   ;;  %v1134_v38 = vld [vmem:[#allocation7 + $0x50] sm:$0xff]   ;;  %v354_v46 = vsub.s32 2, %v345_v45  ;;  %v346_v48 = vsub.s32 0, %v345_v45  ;;  %v350_v49 = vsub.s32 1, %v345_v45 }
  0x65   : > { %999 = vmatprep.subr.bf16.mxu1 %v1327_v0  ;;  %493 = vmatprep.subr.bf16.mxu0 %v1104_v11  ;;  %v1132_v36 = vld [vmem:[#allocation7 + $0x58] sm:$0xff]   ;;  %v1135_v39 = vld [vmem:[#allocation7 + $0x10] sm:$0xff]   ;;  %v1136_v40 = vld [vmem:[#allocation7 + $0x48] sm:$0xff]   ;;  %s750_s12 = scalar_lea.sflag [#allocation4], %s1485_s20  ;;  %s1220_s14 = scalar_lea.vmem %s769_s13, 128 }
  0x66   : > { %v1133_v37 = vld [vmem:[#allocation7 + $0x18] sm:$0xff]   ;;  %v1137_v41 = vld [vmem:[#allocation7 + $0x8] sm:$0xff]   ;;  %v1138_v42 = vld [vmem:[#allocation7 + $0x40] sm:$0xff]   ;;  %p1221_p11 = scmp.ne.s32.totalorder %s769_s13, %s1220_s14  ;;  %p1595_p0 = scmp.ne.s32.totalorder %s1589_s11, 0 }
  0x67   : > { %v1139_v43 = vld [vmem:[#allocation7] sm:$0xff]   ;;  %v342_v47 = vld [vmem:[%s1573_s2] sm:$0x7]  ;;  %s1330_s8 = smov [#allocation8]  }
  0x68   : > { %1000 = vmatpush3.bf16.msra.mxu1 %v1106_v12  ;;  %494 = vmatpush1.bf16.msra.mxu0 %v1107_v13  ;;  %v355_v50 = vrot.slane %v342_v47, %v354_v46  ;;  %v347_v51 = vrot.slane %v342_v47, %v346_v48  ;;  %v351_v53 = vrot.slane %v342_v47, %v350_v49  ;;  %p1222_p1 = pnand %p1221_p11, %p1595_p0  ;;  %s1224_s16 = sshll.u32 %s1330_s8, 4  ;;  %s1225_s16 = int_to_ptr.vmem [resolvable:$false] %s1224_s16 }
  0x69   : > { %1001 = vmatprep.subr.bf16.mxu1 %v1327_v0  ;;  %495 = vmatprep.subr.bf16.mxu0 %v1108_v14  ;;  %s1226_s1 = scalar_lea.vmem %s1225_s16, 256  ;;  %p1227_p6 = scmp.lt.s32.totalorder %s769_s13, %s1225_s16 }
  0x6a   : > { %p1223_p2 = pneg %p1222_p1  ;;  %p1228_p12 = scmp.lt.s32.totalorder %s1226_s1, %s1220_s14 }
  0x6c   : > { %1002 = vmatpush3.bf16.msra.mxu1 %v1110_v15  ;;  %496 = vmatpush1.bf16.msra.mxu0 %v1111_v16  ;;  %p1229_p3 = por %p1228_p12, %p1227_p6 }
  0x6d   : > { %1003 = vmatprep.subr.bf16.mxu1 %v1327_v0  ;;  %497 = vmatprep.subr.bf16.mxu0 %v1112_v17 }
  0x6e   : > { %p1230_p9 = pnand %p1229_p3, %p1223_p2 }
  0x70   : > { %1004 = vmatpush3.bf16.msra.mxu1 %v1114_v18  ;;  %498 = vmatpush1.bf16.msra.mxu0 %v1115_v19 }
  0x71   : > { %1005 = vmatprep.subr.bf16.mxu1 %v1327_v0  ;;  %499 = vmatprep.subr.bf16.mxu0 %v1116_v20 }
  0x74   : > { %1006 = vmatpush3.bf16.msra.mxu1 %v1118_v21  ;;  %500 = vmatpush1.bf16.msra.mxu0 %v1119_v22 }
  0x75   : > { %1007 = vmatprep.subr.bf16.mxu1 %v1327_v0  ;;  %501 = vmatprep.subr.bf16.mxu0 %v1120_v23 }
  0x78   : > { %1008 = vmatpush3.bf16.msra.mxu1 %v1122_v24  ;;  %502 = vmatpush1.bf16.msra.mxu0 %v1123_v26 }
  0x79   : > { %971 = vmatprep.subr.bf16.mxu0 %v1124_v27 }
  0x7b   : > { %1010 = vmatmul.mubr.bf16.vlgmr.msra.gmra.mxu1 %v309_v28  ;;  %520 = vmatmul.mubr.bf16.vlgmr.msra.gmra.mxu0 %v309_v28 }
  0x7c   : > { %972 = vmatpush3.bf16.msra.mxu0 %v1125_v29 }
  0x7d   : > { %973 = vmatprep.subr.bf16.mxu0 %v1126_v30 }
  0x80   : > { %974 = vmatpush3.bf16.msra.mxu0 %v1127_v31 }
  0x81   : > { %975 = vmatprep.subr.bf16.mxu0 %v1128_v32 }
  0x84   : > { %976 = vmatpush3.bf16.msra.mxu0 %v1129_v33 }
  0x85   : > { %977 = vmatprep.subr.bf16.mxu0 %v1130_v34 }
  0x88   : > { %978 = vmatpush3.bf16.msra.mxu0 %v1131_v35 }
  0x89   : > { %979 = vmatprep.subr.bf16.mxu0 %v1132_v36 }
  0x8c   : > { %980 = vmatpush3.bf16.msra.mxu0 %v1133_v37 }
  0x8d   : > { %981 = vmatprep.subr.bf16.mxu0 %v1134_v38 }
  0x90   : > { %982 = vmatpush3.bf16.msra.mxu0 %v1135_v39 }
  0x91   : > { %983 = vmatprep.subr.bf16.mxu0 %v1136_v40 }
  0x94   : > { %984 = vmatpush3.bf16.msra.mxu0 %v1137_v41 }
  0x95   : > { %985 = vmatprep.subr.bf16.mxu0 %v1138_v42 }
  0x98   : > { %986 = vmatpush3.bf16.msra.mxu0 %v1139_v43 }
 0x13b   : > { %v562_v52 = vpop.f32.mrf.mxu1  ;;  %v521_v55 = vpop.f32.mrf.mxu0 }
 0x13c   : > { %v563_v54 = vadd.f32 %v562_v52, %v355_v50  ;;  %v522_v56 = vadd.f32 %v521_v55, %v347_v51 }
 0x13d   : > { %v1011_v57 = vpop.f32.mrf.mxu1  ;;  %v523_v59 = vpop.f32.mrf.mxu0 }
 0x13e   : > { %v570_v58 = vmax.f32 %v563_v54, 0.0  ;;  %568 = vst [vmem:[%s299_s15] sm:$0xff] %v522_v56  ;;  %v524_v60 = vadd.f32 %v523_v59, %v351_v53 }
 0x13f   : > { %v565_v61 = vpop.f32.mrf.mxu1  ;;  %v525_v63 = vpop.f32.mrf.mxu0 }
 0x140   : > { %v572_v62 = vpack.c.bf16 %v570_v58, %v570_v58  ;;  %v569_v0 = vmax.f32 %v524_v60, 0.0 }
 0x141   : > { %v1012_v1 = vpop.f32.mrf.mxu1  ;;  %v526_v2 = vpop.f32.mrf.mxu0 }
 0x142   : > { %740 = vmatprep.mubr.bf16.mxu0 %v572_v62  ;;  %v571_v3 = vpack.c.bf16 %v569_v0, %v569_v0 }
 0x144   : > { %741 = vmatmul.mubr.bf16.vlgmr.msra.gmra.mxu0 %v571_v3 }
 0x145   : > { %1233 = shalt.err (!%p1230_p9)
}
 0x146   : > { %s1234_s7 = scalar_lea.hbm %s766_s10, 128  ;;  %s1238_s15 = scalar_lea.hbm %s1576_s5, 256 }
 0x147   : > { %p1235_p13 = scmp.ne.s32.totalorder %s766_s10, %s1234_s7  ;;  %p1239_p4 = scmp.lt.s32.totalorder %s766_s10, %s1576_s5 }
 0x148   : > { %p1240_p8 = scmp.lt.s32.totalorder %s1238_s15, %s1234_s7 }
 0x149   : > { %p1236_p5 = pnand %p1235_p13, %p1595_p0 }
 0x14a   : > { %p1241_p7 = por %p1240_p8, %p1239_p4 }
 0x14b   : > { %p1237_p10 = pneg %p1236_p5 }
 0x14d   : > { %p1242_p11 = pnand %p1241_p7, %p1237_p10 }
 0x14f   : > { %1245 = shalt.err (!%p1242_p11)
}
 0x150   : > { %1023 = dma.vmem_to_hbm [thread:$0]  (%p1595_p0), %s769_s13, 128, %s766_s10, %s750_s12   ;;  %v939_v5 = vld [vmem:[%s1575_s4] ss:$0 sm:$0xff] }
 0x151   : > { %s306_s16 = scalar_lea.vmem [#allocation9], %s1488_s30  ;;  %s1534_s29 = scalar_lea.hbm %s1577_s6, %s958_s17 }
 0x152   : > { %s781_s1 = sshll.u32 %s306_s16, 4  ;;  %s755_s10 = scalar_lea.sflag [#allocation10], %s1485_s20  ;;  %s782_s1 = int_to_ptr.vmem [resolvable:$true] %s781_s1 }
 0x153   : > { %s1246_s13 = scalar_lea.vmem %s782_s1, 128  ;;  %s1331_s30 = smov [#allocation9]  }
 0x154   : > { %p1247_p1 = scmp.ne.s32.totalorder %s782_s1, %s1246_s13  ;;  %s1250_s12 = sshll.u32 %s1331_s30, 4  ;;  %s1251_s12 = int_to_ptr.vmem [resolvable:$false] %s1250_s12 }
 0x155   : > { %s1252_s15 = scalar_lea.vmem %s1251_s12, 256  ;;  %p1253_p12 = scmp.lt.s32.totalorder %s782_s1, %s1251_s12 }
 0x156   : > { %p1248_p2 = pnand %p1247_p1, %p1595_p0  ;;  %p1254_p3 = scmp.lt.s32.totalorder %s1252_s15, %s1246_s13 }
 0x158   : > { %p1249_p6 = pneg %p1248_p2  ;;  %p1255_p9 = por %p1254_p3, %p1253_p12 }
 0x15a   : > { %p1256_p13 = pnand %p1255_p9, %p1249_p6 }
 0x204   : > { %v987_v4 = vpop.f32.mrf.mxu0 }
 0x206   : > { %v988_v6 = vpop.f32.mrf.mxu0 }
 0x207   : > { %v989_v7 = vadd.f32 %v988_v6, %v987_v4 }
 0x208   : > { %v990_v8 = vpop.f32.mrf.mxu0 }
 0x209   : > { %v743_v9 = vadd.f32 %v989_v7, %v939_v5 }
 0x20a   : > { %v991_v10 = vpop.f32.mrf.mxu0 }
 0x20b   : > { %748 = vst [vmem:[%s306_s16] sm:$0xff] %v743_v9 }
 0x20c   : > { %1259 = shalt.err (!%p1256_p13)
}
 0x20d   : > { %s1260_s25 = scalar_lea.hbm %s1534_s29, 128  ;;  %s1264_s18 = scalar_lea.hbm %s1577_s6, 256 }
 0x20e   : > { %p1261_p5 = scmp.ne.s32.totalorder %s1534_s29, %s1260_s25  ;;  %p1265_p8 = scmp.lt.s32.totalorder %s1534_s29, %s1577_s6 }
 0x20f   : > { %p1266_p7 = scmp.lt.s32.totalorder %s1264_s18, %s1260_s25 }
 0x210   : > { %p1262_p10 = pnand %p1261_p5, %p1595_p0 }
 0x211   : > { %p1267_p11 = por %p1266_p7, %p1265_p8 }
 0x212   : > { %p1263_p4 = pneg %p1262_p10 }
 0x214   : > { %p1268_p1 = pnand %p1267_p11, %p1263_p4 }
 0x216   : > { %1271 = shalt.err (!%p1268_p1)
}
 0x217   : > { %1024 = dma.vmem_to_hbm [thread:$0]  (%p1595_p0), %s782_s1, 128, %s1534_s29, %s755_s10  }
 0x218 PF: > { %s793_s8 = sand.u32 1, %s1306_s21   ;;  %p1596_p2 = scmp.ne.s32.totalorder %s1584_s28, 0 }
 0x219   : > { %p1597_p6 = scmp.ge.s32.totalorder %s1318_s24, 2  ;;  %s794_s16 = scalar_lea.sflag [#allocation4], %s793_s8 }
 0x21b   : > { %p1039_p12 = pnand %p1597_p6, %p1596_p2 }
 0x21d   : > { %p1040_p3 = pneg %p1039_p12 }
 0x21f   : > { %1297 = dma.done.wait (%p1040_p3), %s794_s16, 128  }
 0x220   : > { %1299 = vsyncadd (%p1040_p3), %s794_s16, 4294967168  ;;  %s803_s7 = scalar_lea.sflag [#allocation10], %s793_s8 }
 0x221   : > { %1301 = dma.done.wait (%p1040_p3), %s803_s7, 128  }
 0x222   : > { %1303 = vsyncadd (%p1040_p3), %s803_s7, 4294967168  ;;  %p24_p0 = scmp.ge.s32.totalorder %s1439_s26, 4   ;;  %s1598_s21 = smov %s1310_s22 }
 0x223   : > { %s1599_s22 = smov %s1314_s23  ;;  %s1600_s23 = smov %s1448_s9 }
 0x224   : > { %s1601_s24 = smov %s1439_s26  ;;  %26 = sbr.rel (!%p24_p0) target bundleno = 10 (0xa), region = 110 }
 0x229   :  { %808 = vsyncpa [#allocation3], 1 }
 0x22a   :  { %810 = vsyncpa [#allocation3 + $0x1], 1 }
 0x22b   :  { %811 = vsyncpa [#allocation6], 1 }
 0x22c   :  { %812 = vsyncpa [#allocation4], 1 }
 0x22d   :  { %814 = vsyncpa [#allocation4 + $0x1], 1 }
 0x22e   :  { %815 = vsyncpa [#allocation10], 1 }
 0x22f   :  { %817 = vsyncpa [#allocation10 + $0x1], 1 }

</bundles_post_ra>
